<compile_context>
chip_gen: v5e
topology: v5e:2x2
jax: 0.10.0
libtpu: 0.0.40
codegen_flags: <defaults>
</compile_context>

<pallas_src>
import jax
import jax.numpy as jnp
from jax import lax
from jax.experimental import pallas as pl
from jax.experimental.pallas import tpu as pltpu

IN_DIM = 128          # fixed by nn.Linear(128, hidden_channels)
MID_DIM = 64          # fixed by nn.Linear(hidden_channels, 64)
OUT_DIM = 1           # fixed by nn.Linear(64, 1)


def _round_up(x, m):
    return ((x + m - 1) // m) * m


def _decoder_kernel(x_ref, w1_ref, b1_ref, w2_ref, b2_ref, w3_ref, b3_ref, o_ref):
    """Fused 3-layer MLP + sigmoid over one tile of rows; lane-dense output."""
    x = x_ref[...].astype(jnp.bfloat16)                                # (TN, 128)

    # Layer 1: Linear(128 -> H) + ReLU   (Dropout == identity at inference)
    h1 = jnp.dot(x, w1_ref[...], preferred_element_type=jnp.float32)  # bf16 MXU, f32 acc
    h1 = jnp.maximum(h1 + b1_ref[...], 0.0)                           # (TN, H) f32

    # Layer 2: Linear(H -> 64) + ReLU    (Dropout == identity at inference)
    h2 = jnp.dot(h1.astype(jnp.bfloat16), w2_ref[...],
                 preferred_element_type=jnp.float32)
    h2 = jnp.maximum(h2 + b2_ref[...], 0.0)                           # (TN, 64) f32

    # Layer 3: Linear(64 -> 1), computed as w3 (1,64) contracted with h2's
    # feature axis (i.e. w3 @ h2^T) so the result (1, TN) is lane-dense.
    z = lax.dot_general(w3_ref[...], h2.astype(jnp.bfloat16),
                        (((1,), (1,)), ((), ())),
                        preferred_element_type=jnp.float32)           # (1, TN)
    z = z + b3_ref[...]                                               # bcast (1,1)

    # Numerically stable sigmoid; reciprocal goes to the (otherwise idle) EUP.
    e = jnp.exp(-jnp.abs(z))                                          # (0, 1]
    num = jnp.where(z >= 0, 1.0, e)
    sig = num * pl.reciprocal(1.0 + e, approx=True)

    o_ref[0] = sig.astype(o_ref.dtype)                                # (1, TN)


def extruded_face_decoder(x, params, *, block_n=2048):
    """x: (N, 128) float32 ('loop' node features). Returns (N, 1) float32."""
    n, d = x.shape
    assert d == IN_DIM
    hidden = params["w1"].shape[1]

    if n == 0:
        return jnp.zeros((0, OUT_DIM), jnp.float32)

    # Row tile: large (amortize per-step overhead), multiple of 128 when the
    # grid has several steps, never larger than the (8-rounded) row count.
    bn = min(_round_up(block_n, 128), _round_up(n, 8))
    # Keep >= 2 grid steps when there is enough work so both v7x TensorCores
    # get a share of the 'parallel' axis (harmless on single-core v5e/v6e).
    if n >= 256:
        bn = min(bn, _round_up(-(-n // 2), 128))
    grid_n = pl.cdiv(n, bn)   # last x block may be partial; no HBM pad copy.

    # One-time bf16 cast of the tiny, VMEM-resident MXU weight operands.
    w1 = params["w1"].astype(jnp.bfloat16)
    w2 = params["w2"].astype(jnp.bfloat16)
    w3 = params["w3"].astype(jnp.bfloat16)

    out3 = pl.pallas_call(
        _decoder_kernel,
        out_shape=jax.ShapeDtypeStruct((grid_n, 1, bn), jnp.float32),
        grid_spec=pltpu.PrefetchScalarGridSpec(
            num_scalar_prefetch=0,
            grid=(grid_n,),
            in_specs=[
                pl.BlockSpec((bn, IN_DIM), lambda i: (i, 0)),          # x tile
                pl.BlockSpec((IN_DIM, hidden), lambda i: (0, 0)),      # w1 (resident)
                pl.BlockSpec((1, hidden), lambda i: (0, 0)),           # b1
                pl.BlockSpec((hidden, MID_DIM), lambda i: (0, 0)),     # w2
                pl.BlockSpec((1, MID_DIM), lambda i: (0, 0)),          # b2
                pl.BlockSpec((OUT_DIM, MID_DIM), lambda i: (0, 0)),    # w3 (1, 64)
                pl.BlockSpec((1, OUT_DIM), lambda i: (0, 0)),          # b3 (1, 1)
            ],
            out_specs=pl.BlockSpec((1, 1, bn), lambda i: (i, 0, 0)),
        ),
        compiler_params=pltpu.CompilerParams(
            dimension_semantics=("parallel",),
            vmem_limit_bytes=32 * 1024 * 1024),
    )(x, w1, params["b1"], w2, params["b2"], w3, params["b3"])

    # Lane-dense (grid, 1, bn) -> (N, 1); trailing partial-block rows sliced off.
    return out3.reshape(grid_n * bn, OUT_DIM)[:n]


def init_params(key, hidden_channels):
    """Deterministic synthetic parameters (shapes match the torch module)."""
    ks = jax.random.split(key, 6)

    def u(k, shape, fan_in):
        bound = 1.0 / jnp.sqrt(fan_in)
        return jax.random.uniform(k, shape, jnp.float32, -bound, bound)

    return {
        "w1": u(ks[0], (IN_DIM, hidden_channels), IN_DIM),
        "b1": u(ks[1], (1, hidden_channels), IN_DIM),
        "w2": u(ks[2], (hidden_channels, MID_DIM), hidden_channels),
        "b2": u(ks[3], (1, MID_DIM), hidden_channels),
        "w3": u(ks[4], (OUT_DIM, MID_DIM), MID_DIM),   # (1, 64), torch layout
        "b3": u(ks[5], (1, OUT_DIM), MID_DIM),         # (1, 1)
    }


def reference(x, p):
    h1 = jnp.maximum(x @ p["w1"] + p["b1"], 0.0)
    h2 = jnp.maximum(h1 @ p["w2"] + p["b2"], 0.0)
    return jax.nn.sigmoid(h2 @ p["w3"].T + p["b3"])


if __name__ == "__main__":
    key = jax.random.PRNGKey(0)
    k_x1, k_x2, k_x3, k_p = jax.random.split(key, 4)

    # hidden_channels shrunk to 32 for a small synthetic run (default is 256).
    hidden_channels = 32
    params = init_params(k_p, hidden_channels)

    # bf16 MXU operands (f32 accumulation) -> loosened tolerance vs f32 ref.
    ATOL = 2e-2
    RTOL = 2e-2

    # Case 1: tiny graph (16 'loop' nodes) -> single-tile path (grid=(1,)).
    x_small = jax.random.normal(k_x1, (16, IN_DIM), jnp.float32)
    out_small = jax.block_until_ready(extruded_face_decoder(x_small, params))
    ref_small = reference(x_small, params)
    assert out_small.shape == (16, OUT_DIM)
    assert jnp.allclose(out_small, ref_small, atol=ATOL, rtol=RTOL), \
        "mismatch vs reference (small)"

    # Case 2: multi-tile, lane-dense path: N=384 with block_n=128 -> grid=(3,).
    x_big = jax.random.normal(k_x2, (384, IN_DIM), jnp.float32)
    out_big = jax.block_until_ready(
        extruded_face_decoder(x_big, params, block_n=128))
    ref_big = reference(x_big, params)
    assert out_big.shape == (384, OUT_DIM)
    assert jnp.allclose(out_big, ref_big, atol=ATOL, rtol=RTOL), \
        "mismatch vs reference (big)"

    # Case 3: default block_n, N not a multiple of the tile -> partial last
    # block (no HBM pad copy) and the >=2-step split for v7x (bn=384, grid=2).
    x_tail = jax.random.normal(k_x3, (600, IN_DIM), jnp.float32)
    out_tail = jax.block_until_ready(extruded_face_decoder(x_tail, params))
    ref_tail = reference(x_tail, params)
    assert out_tail.shape == (600, OUT_DIM)
    assert jnp.allclose(out_tail, ref_tail, atol=ATOL, rtol=RTOL), \
        "mismatch vs reference (tail)"

    print("KERNEL_OK")
</pallas_src>

<mosaic_0001>
module attributes {stable_mosaic.version = 11 : i64} {
  func.func @_decoder_kernel(%arg0: i32, %arg1: memref<16x128xf32, #tpu.memory_space<vmem>>, %arg2: memref<128x32xbf16, #tpu.memory_space<vmem>>, %arg3: memref<1x32xf32, #tpu.memory_space<vmem>>, %arg4: memref<32x64xbf16, #tpu.memory_space<vmem>>, %arg5: memref<1x64xf32, #tpu.memory_space<vmem>>, %arg6: memref<1x64xbf16, #tpu.memory_space<vmem>>, %arg7: memref<1x1xf32, #tpu.memory_space<vmem>>, %arg8: memref<1x1x16xf32, #tpu.memory_space<vmem>>) attributes {dimension_semantics = [#tpu.dimension_semantics<parallel>], iteration_bounds = array<i64: 1>, scalar_prefetch = 0 : i64, scratch_operands = 0 : i64, tpu.core_type = #tpu.core_type<tc>, window_params = [{transform_indices = @transform_0, window_bounds = array<i64: 16, 128>}, {pipeline_mode = #tpu.pipeline_mode<synchronous>, transform_indices = @transform_1, window_bounds = array<i64: 128, 32>}, {pipeline_mode = #tpu.pipeline_mode<synchronous>, transform_indices = @transform_2, window_bounds = array<i64: 1, 32>}, {pipeline_mode = #tpu.pipeline_mode<synchronous>, transform_indices = @transform_3, window_bounds = array<i64: 32, 64>}, {pipeline_mode = #tpu.pipeline_mode<synchronous>, transform_indices = @transform_4, window_bounds = array<i64: 1, 64>}, {pipeline_mode = #tpu.pipeline_mode<synchronous>, transform_indices = @transform_5, window_bounds = array<i64: 1, 64>}, {pipeline_mode = #tpu.pipeline_mode<synchronous>, transform_indices = @transform_6, window_bounds = array<i64: 1, 1>}, {transform_indices = @transform_7, window_bounds = array<i64: 1, 1, 16>}]} {
    %c0 = arith.constant 0 : index
    %c0_0 = arith.constant 0 : index
    %0 = vector.load %arg1[%c0, %c0_0] : memref<16x128xf32, #tpu.memory_space<vmem>>, vector<16x128xf32>
    %1 = arith.truncf %0 : vector<16x128xf32> to vector<16x128xbf16>
    %c0_1 = arith.constant 0 : index
    %c0_2 = arith.constant 0 : index
    %2 = vector.load %arg2[%c0_1, %c0_2] : memref<128x32xbf16, #tpu.memory_space<vmem>>, vector<128x32xbf16>
    %cst = arith.constant dense<0.000000e+00> : vector<16x32xf32>
    %3 = tpu.matmul %1, %2, %cst {dimension_numbers = #tpu.dot_dimension_numbers<[1], [0], [0], [1], [0, 0, 1, 1], [], []>} : vector<16x128xbf16>, vector<128x32xbf16>, vector<16x32xf32> -> vector<16x32xf32>
    %c0_3 = arith.constant 0 : index
    %c0_4 = arith.constant 0 : index
    %4 = vector.load %arg3[%c0_3, %c0_4] : memref<1x32xf32, #tpu.memory_space<vmem>>, vector<1x32xf32>
    %5 = vector.broadcast %4 : vector<1x32xf32> to vector<16x32xf32>
    %6 = arith.addf %3, %5 : vector<16x32xf32>
    %cst_5 = arith.constant 0.000000e+00 : f32
    %7 = vector.broadcast %cst_5 : f32 to vector<16x32xf32>
    %8 = arith.maximumf %6, %7 : vector<16x32xf32>
    %9 = arith.truncf %8 : vector<16x32xf32> to vector<16x32xbf16>
    %c0_6 = arith.constant 0 : index
    %c0_7 = arith.constant 0 : index
    %10 = vector.load %arg4[%c0_6, %c0_7] : memref<32x64xbf16, #tpu.memory_space<vmem>>, vector<32x64xbf16>
    %cst_8 = arith.constant dense<0.000000e+00> : vector<16x64xf32>
    %11 = tpu.matmul %9, %10, %cst_8 {dimension_numbers = #tpu.dot_dimension_numbers<[1], [0], [0], [1], [0, 0, 1, 1], [], []>} : vector<16x32xbf16>, vector<32x64xbf16>, vector<16x64xf32> -> vector<16x64xf32>
    %c0_9 = arith.constant 0 : index
    %c0_10 = arith.constant 0 : index
    %12 = vector.load %arg5[%c0_9, %c0_10] : memref<1x64xf32, #tpu.memory_space<vmem>>, vector<1x64xf32>
    %13 = vector.broadcast %12 : vector<1x64xf32> to vector<16x64xf32>
    %14 = arith.addf %11, %13 : vector<16x64xf32>
    %cst_11 = arith.constant 0.000000e+00 : f32
    %15 = vector.broadcast %cst_11 : f32 to vector<16x64xf32>
    %16 = arith.maximumf %14, %15 : vector<16x64xf32>
    %c0_12 = arith.constant 0 : index
    %c0_13 = arith.constant 0 : index
    %17 = vector.load %arg6[%c0_12, %c0_13] : memref<1x64xbf16, #tpu.memory_space<vmem>>, vector<1x64xbf16>
    %18 = arith.truncf %16 : vector<16x64xf32> to vector<16x64xbf16>
    %cst_14 = arith.constant dense<0.000000e+00> : vector<1x16xf32>
    %19 = tpu.matmul %17, %18, %cst_14 {dimension_numbers = #tpu.dot_dimension_numbers<[1], [1], [0], [0], [0, 0, 1, 0], [], []>} : vector<1x64xbf16>, vector<16x64xbf16>, vector<1x16xf32> -> vector<1x16xf32>
    %c0_15 = arith.constant 0 : index
    %c0_16 = arith.constant 0 : index
    %20 = vector.load %arg7[%c0_15, %c0_16] : memref<1x1xf32, #tpu.memory_space<vmem>>, vector<1x1xf32>
    %21 = vector.broadcast %20 : vector<1x1xf32> to vector<1x16xf32>
    %22 = arith.addf %19, %21 : vector<1x16xf32>
    %23 = math.absf %22 : vector<1x16xf32>
    %cst_17 = arith.constant 0.000000e+00 : f32
    %24 = vector.broadcast %cst_17 : f32 to vector<1x16xf32>
    %25 = arith.subf %24, %23 : vector<1x16xf32>
    %26 = math.exp %25 : vector<1x16xf32>
    %cst_18 = arith.constant 0.000000e+00 : f32
    %27 = vector.broadcast %cst_18 : f32 to vector<1x16xf32>
    %28 = arith.cmpf oge, %22, %27 : vector<1x16xf32>
    %cst_19 = arith.constant 1.000000e+00 : f32
    %29 = vector.broadcast %cst_19 : f32 to vector<1x16xf32>
    %30 = arith.select %28, %29, %26 : vector<1x16xi1>, vector<1x16xf32>
    %cst_20 = arith.constant 1.000000e+00 : f32
    %31 = vector.broadcast %cst_20 : f32 to vector<1x16xf32>
    %32 = arith.addf %31, %26 : vector<1x16xf32>
    %33 = tpu.reciprocal %32 {approx = true} : vector<1x16xf32> -> vector<1x16xf32>
    %34 = arith.mulf %30, %33 : vector<1x16xf32>
    %c0_21 = arith.constant 0 : index
    %c0_22 = arith.constant 0 : index
    %c0_23 = arith.constant 0 : index
    %35 = vector.load %arg8[%c0_21, %c0_22, %c0_23] : memref<1x1x16xf32, #tpu.memory_space<vmem>>, vector<1x1x16xf32>
    %36 = vector.shape_cast %35 : vector<1x1x16xf32> to vector<1x16xf32>
    %37 = vector.shape_cast %34 : vector<1x16xf32> to vector<1x1x16xf32>
    tpu.vector_store %arg8[%c0_21, %c0_22, %c0_23], %37 {strides = array<i32>} : memref<1x1x16xf32, #tpu.memory_space<vmem>>, vector<1x1x16xf32>,
    return
  }
  func.func @transform_0(%arg0: i32) -> (i32, i32) {
    %c0_i32 = arith.constant 0 : i32
    %c0_i32_0 = arith.constant 0 : i32
    return %arg0, %c0_i32 : i32, i32
  }
  func.func @transform_1(%arg0: i32) -> (i32, i32) {
    %c0_i32 = arith.constant 0 : i32
    %c0_i32_0 = arith.constant 0 : i32
    %c0_i32_1 = arith.constant 0 : i32
    return %c0_i32, %c0_i32_0 : i32, i32
  }
  func.func @transform_2(%arg0: i32) -> (i32, i32) {
    %c0_i32 = arith.constant 0 : i32
    %c0_i32_0 = arith.constant 0 : i32
    %c0_i32_1 = arith.constant 0 : i32
    return %c0_i32, %c0_i32_0 : i32, i32
  }
  func.func @transform_3(%arg0: i32) -> (i32, i32) {
    %c0_i32 = arith.constant 0 : i32
    %c0_i32_0 = arith.constant 0 : i32
    %c0_i32_1 = arith.constant 0 : i32
    return %c0_i32, %c0_i32_0 : i32, i32
  }
  func.func @transform_4(%arg0: i32) -> (i32, i32) {
    %c0_i32 = arith.constant 0 : i32
    %c0_i32_0 = arith.constant 0 : i32
    %c0_i32_1 = arith.constant 0 : i32
    return %c0_i32, %c0_i32_0 : i32, i32
  }
  func.func @transform_5(%arg0: i32) -> (i32, i32) {
    %c0_i32 = arith.constant 0 : i32
    %c0_i32_0 = arith.constant 0 : i32
    %c0_i32_1 = arith.constant 0 : i32
    return %c0_i32, %c0_i32_0 : i32, i32
  }
  func.func @transform_6(%arg0: i32) -> (i32, i32) {
    %c0_i32 = arith.constant 0 : i32
    %c0_i32_0 = arith.constant 0 : i32
    %c0_i32_1 = arith.constant 0 : i32
    return %c0_i32, %c0_i32_0 : i32, i32
  }
  func.func @transform_7(%arg0: i32) -> (i32, i32, i32) {
    %c0_i32 = arith.constant 0 : i32
    %c0_i32_0 = arith.constant 0 : i32
    %c0_i32_1 = arith.constant 0 : i32
    return %arg0, %c0_i32, %c0_i32_0 : i32, i32, i32
  }
}

</mosaic_0001>

<bundles_post_ra>
// kernel: tpu_custom_call.1
= control target key start
LH: loop header
LB: loop body
LE: loop exit
PB: predicated region body
PF: predicated region fallthrough
CT: control target
= control target key end

     0   :  { %s394_s0 = inlined_call_operand.vmem [shape: f32[16,128], index: 0, kind: input, shape index: {}]   ;;  %s395_s1 = inlined_call_operand.vmem [shape: bf16[128,32], index: 1, kind: input, shape index: {}]   ;;  %s396_s2 = inlined_call_operand.vmem [shape: f32[1,32], index: 2, kind: input, shape index: {}]   ;;  %s397_s3 = inlined_call_operand.vmem [shape: bf16[32,64], index: 3, kind: input, shape index: {}]   ;;  %s398_s4 = inlined_call_operand.vmem [shape: f32[1,64], index: 4, kind: input, shape index: {}]   ;;  %s399_s5 = inlined_call_operand.vmem [shape: bf16[1,64], index: 5, kind: input, shape index: {}]   ;;  %s400_s6 = inlined_call_operand.<no memory space> [shape: f32[1,1], index: 6, kind: input, shape index: {}]   ;;  %s401_s7 = inlined_call_operand.hbm [shape: f32[1,1,16], index: 7, kind: output, shape index: {}]  }
   0x1   :  { %v12_v0 = vstv %s400_s6 }
   0x2   :  { %13 = vst [vmem:[#allocation2] sm:$0x1] %v12_v0 }
   0x3   :  { %v263_v1 = vld [vmem:[%s395_s1 + $0x38] sm:$0xff]  ;;  %v262_v2 = vld [vmem:[%s395_s1 + $0x30] sm:$0xff] }
   0x4   :  { %101 = vmatpush.bf16.msra.mxu0 %v263_v1 }
   0x5   :  { %14 = vsyncpa [#allocation4], 0  ;;  %v261_v3 = vld [vmem:[%s395_s1 + $0x28] sm:$0xff]  ;;  %v260_v4 = vld [vmem:[%s395_s1 + $0x20] sm:$0xff]  ;;  %vm138_vm0 = vcmask 261120   ;;  %v301_v23 = vmov 0  }
   0x6   :  { %v259_v5 = vld [vmem:[%s395_s1 + $0x18] sm:$0xff]  ;;  %v258_v6 = vld [vmem:[%s395_s1 + $0x10] sm:$0xff]  ;;  %v257_v7 = vld [vmem:[%s395_s1 + $0x8] sm:$0xff]  ;;  %268 = vset.pattern.permute.xlu0 %v301_v23  ;;  %vm167_vm1 = vcmask 523264   ;;  %s205_s8 = sshll.u32 %s401_s7, 4  ;;  %vm196_vm3 = vcmask 122880   ;;  %s206_s8 = int_to_ptr.hbm [resolvable:$true] %s205_s8 }
   0x7   :  { %v256_v8 = vld [vmem:[%s395_s1] sm:$0xff]  ;;  %v31_v10 = vld [vmem:[%s394_s0 + $0x8] sm:$0xff] }
   0x8   :  { %102 = vmatpush.bf16.msra.mxu0 %v262_v2  ;;  %v30_v9 = vld [vmem:[%s394_s0] sm:$0xff]  ;;  %v265_v12 = vld [vmem:[%s397_s3 + $0x8] sm:$0xff] }
   0x9   :  { %v32_v11 = vpack.c.bf16 %v31_v10, %v30_v9  ;;  %148 = vmatpush.bf16.msra.mxu1 %v265_v12  ;;  %v264_v13 = vld [vmem:[%s397_s3] sm:$0xff] }
   0xa   :  { %v269_v15 = vld [vmem:[%s396_s2] ss:$0 sm:$0xff] }
   0xb   :  { %v160_v22 = vld [vmem:[#allocation2] sm:$0x1] }
   0xc   :  { %103 = vmatpush.bf16.msra.mxu0 %v261_v3  ;;  %163 = vperm.xlu0 %268, %v160_v22   ;;  %v270_v25 = vld [vmem:[%s398_s4] ss:$0 sm:$0xff]  ;;  %s302_s4 = smov [#allocation3]  }
   0xd   :  { %149 = vmatpush.bf16.msra.mxu1 %v264_v13  ;;  %v158_v33 = vld [vmem:[%s399_s5] sm:$0x1]  ;;  %s203_s28 = sshll.u32 %s302_s4, 4  ;;  %s204_s28 = int_to_ptr.vmem [resolvable:$true] %s203_s28 }
  0x10   :  { %104 = vmatpush.bf16.msra.mxu0 %v260_v4 }
  0x14   :  { %105 = vmatpush.bf16.msra.mxu0 %v259_v5 }
  0x18   :  { %106 = vmatpush.bf16.msra.mxu0 %v258_v6 }
  0x1c   :  { %107 = vmatpush.bf16.msra.mxu0 %v257_v7 }
  0x20   :  { %108 = vmatpush.bf16.msra.mxu0 %v256_v8 }
  0x23   :  { %109 = vmatmul.bf16.vlgmr.msra.gmra.mxu0 %v32_v11 }
  0x7e   :  { %v164_v34 = vpop.permute.xlu0 %163 }
  0x7f   :  { %v166_v35 = vperm.slane %v164_v34, 0 }
  0xa0   :  { %v110_v14 = vpop.f32.mrf.mxu0 }
  0xa1   :  { %v111_v16 = vadd.f32 %v269_v15, %v110_v14 }
  0xa3   :  { %v115_v19 = vmax.f32 %v111_v16, 0.0 }
  0xa8   :  { %v112_v17 = vpop.f32.mrf.mxu0 }
  0xa9   :  { %v113_v18 = vadd.f32 %v269_v15, %v112_v17 }
  0xab   :  { %v116_v20 = vmax.f32 %v113_v18, 0.0 }
  0xad   :  { %v117_v21 = vpack.c.bf16 %v116_v20, %v115_v19 }
  0xaf   :  { %254 = vmatmul.msk.bf16.vlgmr.msra.gmra.mxu1 %vm138_vm0, %v117_v21 }
 0x12c   :  { %v151_v24 = vpop.f32.mrf.mxu1 }
 0x12d   :  { %v152_v26 = vadd.f32 %v270_v25, %v151_v24 }
 0x12f   :  { %v156_v29 = vmax.f32 %v152_v26, 0.0 }
 0x134   :  { %v153_v27 = vpop.f32.mrf.mxu1 }
 0x135   :  { %v154_v28 = vadd.f32 %v270_v25, %v153_v27 }
 0x137   :  { %v157_v30 = vmax.f32 %v154_v28, 0.0 }
 0x139   :  { %v159_v31 = vpack.c.bf16 %v157_v30, %v156_v29 }
 0x13b   :  { %v172_v32 = vsel %vm167_vm1, %v159_v31, 0 }
 0x13c   :  { %181 = vmatpush.bf16.xpose.msra.mxu2 %v172_v32 }
 0x143   :  { %255 = vmatmul.msk.bf16.vlgmr.msra.gmra.mxu2 %vm167_vm1, %v158_v33 }
 0x1c6   :  { %v183_v36 = vpop.f32.mrf.mxu2 }
 0x1c7   :  { %v184_v37 = vadd.f32 %v183_v36, %v166_v35 }
 0x1c9   :  { %v187_v38 = vand.u32 2147483647, %v184_v37  ;;  %vm191_vm2 = vcmp.ge.f32.partialorder %v184_v37, 0.0 }
 0x1cb   :  { %v188_v39 = vsub.f32 0.0, %v187_v38 }
 0x1cd   :  { %v189_v40 = vmul.f32 1.442695, %v188_v39 }
 0x1ce   :  { %v185_v41 = vpop.f32.mrf.mxu2 }
 0x1cf   :  { %271 = vpow2.f32 %v189_v40 }
 0x1d5   :  { %v272_v42 = vpop.eup %271 }
 0x1d6   :  { %v193_v43 = vadd.f32 1.0, %v272_v42  ;;  %v192_v45 = vsel %vm191_vm2, 1.0, %v272_v42 }
 0x1d8   :  { %273 = vrcp.f32 %v193_v43 }
 0x1de   :  { %v274_v44 = vpop.eup %273 }
 0x1df   :  { %v195_v46 = vmul.f32 %v274_v44, %v192_v45 }
 0x1e1   :  { %197 = vst.msk [vmem:[#allocation3] sm:$0x1] %vm196_vm3, %v195_v46 }
 0x1e2   :  { %208 = dma.vmem_to_hbm [thread:$0]  %s204_s28, 16, %s206_s8, [#allocation4]  }
 0x1e3   :  { %299 = dma.done.wait [#allocation4], 16  }
 0x1e4   :  { %300 = vsyncadd [#allocation4], 4294967280 }
 0x1e5   :  { %213 = vsyncpa [#allocation4], 1 }

</bundles_post_ra>
